<compile_context>
chip_gen: v5e
topology: v5e:2x2
jax: 0.10.0
libtpu: 0.0.40
codegen_flags: <defaults>
</compile_context>

<pallas_src>
import functools

import jax
import jax.numpy as jnp
from jax import lax
from jax.experimental import pallas as pl
from jax.experimental.pallas import tpu as pltpu

MAT_DIFF_LOSS_SCALE = 0.001

# If the [B,K,K,K] VPU intermediate would exceed this, fall back to the MXU path.
_VPU_GRAM_BYTES_LIMIT = 2 * 1024 * 1024


def _get_loss_kernel(pred_ref, target_ref, trans_ref, out_ref, *, mat_diff_loss_scale):
    B, C = pred_ref.shape
    K = trans_ref.shape[-1]

    # ---- NLL loss (mean reduction): -mean_b pred[b, target[b]] ----
    pred = pred_ref[...].astype(jnp.float32)                 # [B, C]
    # Splat the SMEM scalar labels into a [B, 1] column (B is small & static).
    row_iota = lax.broadcasted_iota(jnp.int32, (B, 1), 0)
    tcol = jnp.zeros((B, 1), jnp.int32)
    for b in range(B):
        tcol = jnp.where(row_iota == b, target_ref[b], tcol)
    class_iota = lax.broadcasted_iota(jnp.int32, (B, C), 1)
    onehot = class_iota == tcol                              # [B, C] bool
    picked = jnp.where(onehot, pred, 0.0)                    # -inf-safe "gather"
    nll = -jnp.sum(picked) / B                               # scalar (f32)

    # ---- Feature-transform regularizer: mean_b ||T_b T_b^T - I||_F ----
    if B * K * K * K * 4 <= _VPU_GRAM_BYTES_LIMIT:
        # Tiny per-batch Gram: keep it on the VPU (an 8x8/64x64 matmul uses a
        # tiny fraction of the MXU and pays per-batch fill/drain latency).
        t32 = trans_ref[...].astype(jnp.float32)             # [B, K, K]
        gram = jnp.sum(t32[:, :, None, :] * t32[:, None, :, :], axis=-1)  # [B,K,K]
    else:
        # Large problem: batched MXU matmul, f32 accumulate (bf16 operands OK).
        trans = trans_ref[...]
        gram = lax.dot_general(
            trans, trans,
            dimension_numbers=(((2,), (2,)), ((0,), (0,))),
            preferred_element_type=jnp.float32)              # [B, K, K]
        t32 = trans.astype(jnp.float32)

    # ||G - I||_F^2 = ||G||_F^2 - 2*tr(G) + K,   tr(G) = ||T||_F^2
    tr = jnp.sum(jnp.sum(t32 * t32, axis=2), axis=1, keepdims=True)       # [B, 1]
    gsq = jnp.sum(jnp.sum(gram * gram, axis=2), axis=1, keepdims=True)    # [B, 1]
    frob_sq = jnp.maximum(gsq - 2.0 * tr + jnp.float32(K), 0.0)           # fp safety
    mat_diff_loss = jnp.sum(jnp.sqrt(frob_sq)) / B                        # scalar

    out_ref[0] = nll + mat_diff_loss * mat_diff_loss_scale


def get_loss(pred, target, trans_feat, mat_diff_loss_scale=MAT_DIFF_LOSS_SCALE):
    """pred: [B, C] log-probs; target: [B] int labels; trans_feat: [B, K, K]."""
    B, C = pred.shape
    K = trans_feat.shape[-1]
    if target.dtype != jnp.int32:
        target = target.astype(jnp.int32)   # no-op in the common int32 case

    # TODO(synk): wrap in jax.custom_vjp before using under jax.grad (pallas_call
    #             has no automatic VJP; also d/dx sqrt at 0 is inf for a perfectly
    #             orthogonal transform).
    # TODO(synk): for very large B, tile the batch with a 1-D "arbitrary" grid and
    #             an SMEM accumulator to stay inside v7x's 64 MiB VMEM; at
    #             PointNet scale the single-invocation form is optimal.
    out = pl.pallas_call(
        functools.partial(_get_loss_kernel, mat_diff_loss_scale=mat_diff_loss_scale),
        out_shape=jax.ShapeDtypeStruct((1,), jnp.float32),
        in_specs=[
            pl.BlockSpec((B, C), lambda: (0, 0)),                  # pred   -> VMEM
            pl.BlockSpec(memory_space=pltpu.MemorySpace.SMEM),     # target -> SMEM
            pl.BlockSpec((B, K, K), lambda: (0, 0, 0)),            # trans  -> VMEM
        ],
        out_specs=pl.BlockSpec(memory_space=pltpu.MemorySpace.SMEM),
    )(pred, target, trans_feat)
    return out[0]


if __name__ == "__main__":
    key = jax.random.PRNGKey(0)
    k1, k2, k3 = jax.random.split(key, 3)

    B, C, K = 2, 16, 8   # small shapes: batch=2, 16 classes, 8x8 feature transform
    logits = jax.random.normal(k1, (B, C), dtype=jnp.float32)
    pred = jax.nn.log_softmax(logits, axis=-1)                    # log-probs (PointNet head)
    target = jax.random.randint(k2, (B,), 0, C, dtype=jnp.int32)
    trans_feat = jax.random.normal(k3, (B, K, K), dtype=jnp.float32)

    total = get_loss(pred, target, trans_feat)
    jax.block_until_ready(total)

    # Pure-JAX reference for sanity.
    ref_nll = -jnp.mean(pred[jnp.arange(B), target])
    gram = jnp.einsum('bij,bkj->bik', trans_feat, trans_feat)
    diff = gram - jnp.eye(K)[None, :, :]
    ref_mat = jnp.mean(jnp.sqrt(jnp.sum(diff * diff, axis=(1, 2))))
    ref = ref_nll + MAT_DIFF_LOSS_SCALE * ref_mat
    assert jnp.allclose(total, ref, rtol=1e-5, atol=1e-5), (total, ref)

    print("KERNEL_OK")
</pallas_src>

<mosaic_0001>
module attributes {stable_mosaic.version = 11 : i64} {
  func.func @_get_loss_kernel(%arg0: memref<2x16xf32, #tpu.memory_space<vmem>>, %arg1: memref<2xi32, #tpu.memory_space<smem>>, %arg2: memref<2x8x8xf32, #tpu.memory_space<vmem>>, %arg3: memref<1xf32, #tpu.memory_space<smem>>) attributes {dimension_semantics = [], scalar_prefetch = 0 : i64, scratch_operands = 0 : i64, tpu.core_type = #tpu.core_type<tc>} {
    %c0 = arith.constant 0 : index
    %c0_0 = arith.constant 0 : index
    %0 = vector.load %arg0[%c0, %c0_0] : memref<2x16xf32, #tpu.memory_space<vmem>>, vector<2x16xf32>
    %1 = tpu.iota {dimensions = array<i32: 0>} : vector<2x1xi32>
    %c0_i32 = arith.constant 0 : i32
    %2 = vector.broadcast %c0_i32 : i32 to vector<2x1xi32>
    %c0_i32_1 = arith.constant 0 : i32
    %3 = vector.broadcast %c0_i32_1 : i32 to vector<2x1xi32>
    %4 = arith.cmpi eq, %1, %3 : vector<2x1xi32>
    %c0_2 = arith.constant 0 : index
    %5 = memref.load %arg1[%c0_2] : memref<2xi32, #tpu.memory_space<smem>>
    %6 = vector.broadcast %5 : i32 to vector<2x1xi32>
    %7 = arith.select %4, %6, %2 : vector<2x1xi1>, vector<2x1xi32>
    %c1_i32 = arith.constant 1 : i32
    %8 = vector.broadcast %c1_i32 : i32 to vector<2x1xi32>
    %9 = arith.cmpi eq, %1, %8 : vector<2x1xi32>
    %c1 = arith.constant 1 : index
    %10 = memref.load %arg1[%c1] : memref<2xi32, #tpu.memory_space<smem>>
    %11 = vector.broadcast %10 : i32 to vector<2x1xi32>
    %12 = arith.select %9, %11, %7 : vector<2x1xi1>, vector<2x1xi32>
    %13 = tpu.iota {dimensions = array<i32: 1>} : vector<2x16xi32>
    %14 = vector.broadcast %12 : vector<2x1xi32> to vector<2x16xi32>
    %15 = arith.cmpi eq, %13, %14 : vector<2x16xi32>
    %cst = arith.constant 0.000000e+00 : f32
    %16 = vector.broadcast %cst : f32 to vector<2x16xf32>
    %17 = arith.select %15, %0, %16 : vector<2x16xi1>, vector<2x16xf32>
    %18 = vector.shape_cast %17 : vector<2x16xf32> to vector<1x2x16xf32>
    %cst_3 = arith.constant dense<0.000000e+00> : vector<1xf32>
    %19 = vector.multi_reduction <add>, %18, %cst_3 [1, 2] : vector<1x2x16xf32> to vector<1xf32>
    %20 = vector.shape_cast %19 : vector<1xf32> to vector<1x1x1xf32>
    %21 = vector.extract %20[0, 0, 0] : f32 from vector<1x1x1xf32>
    %cst_4 = arith.constant 0.000000e+00 : f32
    %22 = arith.subf %cst_4, %21 : f32
    %cst_5 = arith.constant 2.000000e+00 : f32
    %23 = arith.divf %22, %cst_5 : f32
    %c0_6 = arith.constant 0 : index
    %c0_7 = arith.constant 0 : index
    %c0_8 = arith.constant 0 : index
    %24 = vector.load %arg2[%c0_6, %c0_7, %c0_8] : memref<2x8x8xf32, #tpu.memory_space<vmem>>, vector<2x8x8xf32>
    %25 = vector.shape_cast %24 : vector<2x8x8xf32> to vector<2x8x1x8xf32>
    %26 = vector.shape_cast %24 : vector<2x8x8xf32> to vector<2x1x8x8xf32>
    %27 = vector.broadcast %25 : vector<2x8x1x8xf32> to vector<2x8x8x8xf32>
    %28 = vector.broadcast %26 : vector<2x1x8x8xf32> to vector<2x8x8x8xf32>
    %29 = arith.mulf %27, %28 : vector<2x8x8x8xf32>
    %cst_9 = arith.constant dense<0.000000e+00> : vector<2x8x8xf32>
    %30 = vector.multi_reduction <add>, %29, %cst_9 [3] : vector<2x8x8x8xf32> to vector<2x8x8xf32>
    %31 = arith.mulf %24, %24 : vector<2x8x8xf32>
    %cst_10 = arith.constant dense<0.000000e+00> : vector<2x8xf32>
    %32 = vector.multi_reduction <add>, %31, %cst_10 [2] : vector<2x8x8xf32> to vector<2x8xf32>
    %cst_11 = arith.constant dense<0.000000e+00> : vector<2xf32>
    %33 = vector.multi_reduction <add>, %32, %cst_11 [1] : vector<2x8xf32> to vector<2xf32>
    %34 = vector.shape_cast %33 : vector<2xf32> to vector<2x1xf32>
    %35 = arith.mulf %30, %30 : vector<2x8x8xf32>
    %cst_12 = arith.constant dense<0.000000e+00> : vector<2x8xf32>
    %36 = vector.multi_reduction <add>, %35, %cst_12 [2] : vector<2x8x8xf32> to vector<2x8xf32>
    %cst_13 = arith.constant dense<0.000000e+00> : vector<2xf32>
    %37 = vector.multi_reduction <add>, %36, %cst_13 [1] : vector<2x8xf32> to vector<2xf32>
    %38 = vector.shape_cast %37 : vector<2xf32> to vector<2x1xf32>
    %cst_14 = arith.constant 2.000000e+00 : f32
    %39 = vector.broadcast %cst_14 : f32 to vector<2x1xf32>
    %40 = arith.mulf %39, %34 : vector<2x1xf32>
    %41 = arith.subf %38, %40 : vector<2x1xf32>
    %cst_15 = arith.constant 8.000000e+00 : f32
    %42 = vector.broadcast %cst_15 : f32 to vector<2x1xf32>
    %43 = arith.addf %41, %42 : vector<2x1xf32>
    %cst_16 = arith.constant 0.000000e+00 : f32
    %44 = vector.broadcast %cst_16 : f32 to vector<2x1xf32>
    %45 = arith.maximumf %43, %44 : vector<2x1xf32>
    %46 = math.sqrt %45 : vector<2x1xf32>
    %47 = vector.shape_cast %46 : vector<2x1xf32> to vector<1x2x1xf32>
    %cst_17 = arith.constant dense<0.000000e+00> : vector<1xf32>
    %48 = vector.multi_reduction <add>, %47, %cst_17 [1, 2] : vector<1x2x1xf32> to vector<1xf32>
    %49 = vector.shape_cast %48 : vector<1xf32> to vector<1x1x1xf32>
    %50 = vector.extract %49[0, 0, 0] : f32 from vector<1x1x1xf32>
    %cst_18 = arith.constant 2.000000e+00 : f32
    %51 = arith.divf %50, %cst_18 : f32
    %cst_19 = arith.constant 1.000000e-03 : f32
    %52 = arith.mulf %51, %cst_19 : f32
    %53 = arith.addf %23, %52 : f32
    %c0_20 = arith.constant 0 : index
    %54 = memref.load %arg3[%c0_20] : memref<1xf32, #tpu.memory_space<smem>>
    memref.store %53, %arg3[%c0_20] : memref<1xf32, #tpu.memory_space<smem>>
    return
  }
}

</mosaic_0001>

<bundles_post_ra>
// kernel: tpu_custom_call.1
= control target key start
LH: loop header
LB: loop body
LE: loop exit
PB: predicated region body
PF: predicated region fallthrough
CT: control target
= control target key end

     0   :  { %8 = vsyncpa [#allocation3], 0  ;;  %s609_s0 = inlined_call_operand.hbm [shape: f32[2,16], index: 0, kind: input, shape index: {}]   ;;  %s610_s1 = inlined_call_operand.hbm [shape: s32[2], index: 1, kind: input, shape index: {}]   ;;  %s611_s2 = inlined_call_operand.hbm [shape: f32[2,8,8], index: 2, kind: input, shape index: {}]   ;;  %s612_s3 = inlined_call_operand.hbm [shape: f32[1], index: 3, kind: output, shape index: {}]  }
   0x1   :  { %9 = vsyncpa [#allocation4], 0 }
   0x2   :  { %10 = vsyncpa [#allocation8], 0 }
   0x3   :  { %11 = vsyncpa [#allocation5], 0  ;;  %s17_s14 = sshll.u32 %s609_s0, 4  ;;  %s469_s15 = smov [#allocation2]   ;;  %s18_s14 = int_to_ptr.hbm [resolvable:$true] %s17_s14 }
   0x4   :  { %s19_s16 = sshll.u32 %s469_s15, 4  ;;  %s28_s19 = sshll.u32 %s610_s1, 4  ;;  %s20_s16 = int_to_ptr.vmem [resolvable:$true] %s19_s16  ;;  %s29_s19 = int_to_ptr.hbm [resolvable:$true] %s28_s19 }
   0x5   :  { %22 = dma.hbm_to_vmem [thread:$0]  %s18_s14, 32, %s20_s16, [#allocation3]  }
   0x6   :  { %s470_s20 = smov [#allocation6]   ;;  %s36_s23 = sshll.u32 %s611_s2, 4  ;;  %s37_s23 = int_to_ptr.hbm [resolvable:$true] %s36_s23 }
   0x7   :  { %31 = dma.hbm_to_smem %s29_s19, 16, %s470_s20, [#allocation4]  }
   0x8   :  { %s471_s24 = smov [#allocation7]   ;;  %s472_s0 = smov 128  }
   0x9   :  { %s38_s25 = sshll.u32 %s471_s24, 4  ;;  %s473_s26 = smov 8   ;;  %s39_s25 = int_to_ptr.vmem [resolvable:$true] %s38_s25 }
   0xa   :  { %44 = dma.hbm_to_vmem [thread:$0]  %s37_s23, 256, %s39_s25, [#allocation8], %s472_s0, %s472_s0, %s473_s26  }
   0xb   :  { %461 = dma.done.wait [#allocation3], 32  }
   0xc   :  { %462 = vsyncadd [#allocation3], 4294967264 }
   0xd   :  { %463 = dma.done.wait [#allocation4], 16  }
   0xe   :  { %464 = vsyncadd [#allocation4], 4294967280 }
   0xf   :  { %465 = dma.done.wait [#allocation8], 256  }
  0x10   :  { %466 = vsyncadd [#allocation8], 4294967040 }
  0x11   :  { %57 = sfence }
  0x12   :  { %v505_v0 = vld [vmem:[#allocation7 + $0x8] sm:$0xff]  ;;  %v507_v1 = vld [vmem:[#allocation7] sm:$0xff]  ;;  %vm160_vm0 = vcmask 64512   ;;  %vm221_vm1 = vcmask 1041409   ;;  %vm277_vm2 = vcmask 1042434   ;;  %vm279_vm3 = vcmask 1043459  }
  0x13   :  { %v120_v2 = vperm.slane %v505_v0, 0  ;;  %v112_v3 = vperm.slane %v507_v1, 0  ;;  %v99_v4 = vrot.slane %v507_v1, 2  ;;  %v105_v5 = vrot.slane %v505_v0, 1  ;;  %s62_s1 = sld [smem:[#allocation6]]  ;;  %s358_s7 = sshll.u32 %s612_s3, 4  ;;  %s359_s7 = int_to_ptr.hbm [resolvable:$true] %s358_s7 }
  0x14   :  { %v98_v6 = vrot.slane %v507_v1, 1  ;;  %v106_v7 = vrot.slane %v505_v0, 2  ;;  %v107_v17 = vrot.slane %v505_v0, 3  ;;  %v100_v21 = vrot.slane %v507_v1, 3  ;;  %s371_s2 = sld [smem:[#allocation6 + $0x1]]  ;;  %s475_s11 = smov [#allocation9]  }
  0x15   :  { %v152_v8 = vmul.f32 %v120_v2, %v505_v0  ;;  %v144_v9 = vmul.f32 %v112_v3, %v507_v1  ;;  %v114_v10 = vperm.slane %v99_v4, 0  ;;  %v121_v11 = vperm.slane %v105_v5, 0 }
  0x16   :  { %v113_v12 = vperm.slane %v98_v6, 0  ;;  %v122_v16 = vperm.slane %v106_v7, 0  ;;  %v101_v23 = vrot.slane %v507_v1, 4  ;;  %v123_v26 = vperm.slane %v107_v17, 0 }
  0x17   :  { %v185_v13 = vsel %vm160_vm0, %v152_v8, 0.0  ;;  %v161_v14 = vsel %vm160_vm0, %v144_v9, 0.0  ;;  %v146_v15 = vmul.f32 %v114_v10, %v507_v1  ;;  %v153_v19 = vmul.f32 %v121_v11, %v505_v0 }
  0x18   :  { %186 = vadd.xlane.f32.xlu1 %v185_v13  ;;  %162 = vadd.xlane.f32.xlu0 %v161_v14  ;;  %v145_v20 = vmul.f32 %v113_v12, %v507_v1  ;;  %v154_v22 = vmul.f32 %v122_v16, %v505_v0  ;;  %v115_v27 = vperm.slane %v100_v21, 0  ;;  %v116_v29 = vperm.slane %v101_v23, 0 }
  0x19   :  { %v167_v18 = vsel %vm160_vm0, %v146_v15, 0.0  ;;  %v188_v24 = vsel %vm160_vm0, %v153_v19, 0.0  ;;  %v155_v30 = vmul.f32 %v123_v26, %v505_v0  ;;  %v102_v32 = vrot.slane %v507_v1, 5 }
  0x1a   :  { %168 = vadd.xlane.f32.xlu2 %v167_v18  ;;  %v164_v25 = vsel %vm160_vm0, %v145_v20, 0.0  ;;  %v191_v28 = vsel %vm160_vm0, %v154_v22, 0.0  ;;  %v147_v31 = vmul.f32 %v115_v27, %v507_v1  ;;  %v108_v33 = vrot.slane %v505_v0, 4 }
  0x1b   :  { %v148_v34 = vmul.f32 %v116_v29, %v507_v1  ;;  %v109_v35 = vrot.slane %v505_v0, 5  ;;  %v194_v36 = vsel %vm160_vm0, %v155_v30, 0.0  ;;  %v117_v38 = vperm.slane %v102_v32, 0 }
  0x1c   :  { %v170_v37 = vsel %vm160_vm0, %v147_v31, 0.0  ;;  %v124_v39 = vperm.slane %v108_v33, 0  ;;  %v110_v44 = vrot.slane %v505_v0, 6  ;;  %v103_v45 = vrot.slane %v507_v1, 6 }
  0x1d   :  { %v173_v40 = vsel %vm160_vm0, %v148_v34, 0.0  ;;  %v125_v41 = vperm.slane %v109_v35, 0  ;;  %v149_v42 = vmul.f32 %v117_v38, %v507_v1  ;;  %v104_v47 = vrot.slane %v507_v1, 7 }
  0x1e   :  { %v156_v43 = vmul.f32 %v124_v39, %v505_v0  ;;  %v126_v50 = vperm.slane %v110_v44, 0  ;;  %v118_v51 = vperm.slane %v103_v45, 0  ;;  %v111_v56 = vrot.slane %v505_v0, 7 }
  0x1f   :  { %v157_v46 = vmul.f32 %v125_v41, %v505_v0  ;;  %v176_v48 = vsel %vm160_vm0, %v149_v42, 0.0  ;;  %v119_v53 = vperm.slane %v104_v47, 0  ;;  %v209_v5 = vmul.f32 %v507_v1, %v507_v1 }
  0x20   :  { %189 = vadd.xlane.f32.xlu1 %v188_v24  ;;  %165 = vadd.xlane.f32.xlu0 %v164_v25  ;;  %v197_v49 = vsel %vm160_vm0, %v156_v43, 0.0  ;;  %v158_v54 = vmul.f32 %v126_v50, %v505_v0  ;;  %v150_v55 = vmul.f32 %v118_v51, %v507_v1  ;;  %v127_v60 = vperm.slane %v111_v56, 0 }
  0x21   :  { %v200_v52 = vsel %vm160_vm0, %v157_v46, 0.0  ;;  %v151_v57 = vmul.f32 %v119_v53, %v507_v1  ;;  %v210_v6 = vmul.f32 %v505_v0, %v505_v0  ;;  %v211_v7 = vsel %vm160_vm0, %v209_v5, 0.0 }
  0x22   :  { %192 = vadd.xlane.f32.xlu2 %v191_v28  ;;  %v203_v58 = vsel %vm160_vm0, %v158_v54, 0.0  ;;  %v179_v59 = vsel %vm160_vm0, %v150_v55, 0.0  ;;  %v159_v62 = vmul.f32 %v127_v60, %v505_v0  ;;  %v59_v14 = vlaneseq }
  0x23   :  { %v182_v61 = vsel %vm160_vm0, %v151_v57, 0.0  ;;  %v214_v8 = vsel %vm160_vm0, %v210_v6, 0.0  ;;  %vm281_vm4 = vcmask 1044484   ;;  %vm283_vm5 = vcmask 1045509  }
  0x24   :  { %v206_v63 = vsel %vm160_vm0, %v159_v62, 0.0  ;;  %v564_v17 = vand.u32 127, %v59_v14  ;;  %vm285_vm6 = vcmask 1046534   ;;  %vm287_vm7 = vcmask 1047559  }
  0x25   :  { %vm224_vm8 = vcmask 58368   ;;  %vm73_vm11 = vcmask 123904   ;;  %vm329_vm14 = vcmask 1024  }
  0x28   :  { %195 = vadd.xlane.f32.xlu1 %v194_v36  ;;  %171 = vadd.xlane.f32.xlu0 %v170_v37 }
  0x2a   :  { %174 = vadd.xlane.f32.xlu2 %v173_v40 }
  0x30   :  { %177 = vadd.xlane.f32.xlu1 %v176_v48  ;;  %198 = vadd.xlane.f32.xlu0 %v197_v49 }
  0x32   :  { %201 = vadd.xlane.f32.xlu2 %v200_v52 }
  0x38   :  { %204 = vadd.xlane.f32.xlu1 %v203_v58  ;;  %180 = vadd.xlane.f32.xlu0 %v179_v59 }
  0x3a   :  { %183 = vadd.xlane.f32.xlu2 %v182_v61 }
  0x40   :  { %207 = vadd.xlane.f32.xlu0 %v206_v63  ;;  %212 = vadd.xlane.f32.xlu1 %v211_v7 }
  0x42   :  { %215 = vadd.xlane.f32.xlu2 %v214_v8 }
  0x8b   :  { %v187_v2 = vpop.xlane.xlu1 %186  ;;  %v163_v3 = vpop.xlane.xlu0 %162 }
  0x8c   :  { %v228_v1 = vmul.f32 %v163_v3, %v163_v3  ;;  %v236_v22 = vmul.f32 %v187_v2, %v187_v2 }
  0x8d   :  { %v169_v4 = vpop.xlane.xlu2 %168 }
  0x8e   :  { %v230_v18 = vmul.f32 %v169_v4, %v169_v4  ;;  %v260_v23 = vperm.slane %v228_v1, %v564_v17  ;;  %v268_v31 = vperm.slane %v236_v22, %v564_v17  ;;  %v67_v22 = vstv %s371_s2 }
  0x90   :  { %v262_v26 = vperm.slane %v230_v18, %v564_v17 }
  0x93   :  { %v190_v9 = vpop.xlane.xlu1 %189  ;;  %v166_v10 = vpop.xlane.xlu0 %165 }
  0x94   :  { %v229_v16 = vmul.f32 %v166_v10, %v166_v10  ;;  %v237_v24 = vmul.f32 %v190_v9, %v190_v9 }
  0x95   :  { %v193_v11 = vpop.xlane.xlu2 %192 }
  0x96   :  { %v261_v0 = vperm.slane %v229_v16, %v564_v17  ;;  %v269_v32 = vperm.slane %v237_v24, %v564_v17  ;;  %v238_v33 = vmul.f32 %v193_v11, %v193_v11 }
  0x98   :  { %v276_v28 = vsel %vm221_vm1, %v261_v0, %v260_v23  ;;  %v289_v43 = vsel %vm221_vm1, %v269_v32, %v268_v31  ;;  %v270_v44 = vperm.slane %v238_v33, %v564_v17  ;;  %v58_v23 = vld [vmem:[#allocation2] sm:$0x3] }
  0x99   :  { %v278_v35 = vsel %vm277_vm2, %v262_v26, %v276_v28 }
  0x9a   :  { %v290_v56 = vsel %vm277_vm2, %v270_v44, %v289_v43 }
  0x9b   :  { %v196_v12 = vpop.xlane.xlu1 %195  ;;  %v172_v13 = vpop.xlane.xlu0 %171 }
  0x9c   :  { %v231_v19 = vmul.f32 %v172_v13, %v172_v13  ;;  %v239_v34 = vmul.f32 %v196_v12, %v196_v12 }
  0x9d   :  { %v175_v15 = vpop.xlane.xlu2 %174 }
  0x9e   :  { %v232_v27 = vmul.f32 %v175_v15, %v175_v15  ;;  %v263_v29 = vperm.slane %v231_v19, %v564_v17  ;;  %v271_v45 = vperm.slane %v239_v34, %v564_v17 }
  0xa0   :  { %v264_v36 = vperm.slane %v232_v27, %v564_v17  ;;  %v280_v37 = vsel %vm279_vm3, %v263_v29, %v278_v35  ;;  %v291_v57 = vsel %vm279_vm3, %v271_v45, %v290_v56 }
  0xa2   :  { %v282_v47 = vsel %vm281_vm4, %v264_v36, %v280_v37 }
  0xa3   :  { %v178_v20 = vpop.xlane.xlu1 %177  ;;  %v199_v21 = vpop.xlane.xlu0 %198 }
  0xa4   :  { %v233_v30 = vmul.f32 %v178_v20, %v178_v20  ;;  %v240_v39 = vmul.f32 %v199_v21, %v199_v21  ;;  %v60_v20 = vshrl.u32 %v59_v14, 7  ;;  %v63_v21 = vstv %s62_s1 }
  0xa5   :  { %v202_v25 = vpop.xlane.xlu2 %201 }
  0xa6   :  { %v265_v38 = vperm.slane %v233_v30, %v564_v17  ;;  %v241_v48 = vmul.f32 %v202_v25, %v202_v25  ;;  %v272_v51 = vperm.slane %v240_v39, %v564_v17  ;;  %vm61_vm9 = vcmp.eq.s32.totalorder %v60_v20, 0 }
  0xa7   :  { %vm65_vm10 = vcmp.eq.s32.totalorder %v60_v20, 1  ;;  %v64_v24 = vsel %vm61_vm9, %v63_v21, 0 }
  0xa8   :  { %v284_v53 = vsel %vm283_vm5, %v265_v38, %v282_v47  ;;  %v273_v58 = vperm.slane %v241_v48, %v564_v17  ;;  %v292_v60 = vsel %vm281_vm4, %v272_v51, %v291_v57  ;;  %v68_v25 = vsel %vm65_vm10, %v67_v22, %v64_v24 }
  0xa9   :  { %vm71_vm12 = vcmp.eq.s32.totalorder %v564_v17, %v68_v25 }
  0xaa   :  { %v293_v4 = vsel %vm283_vm5, %v273_v58, %v292_v60  ;;  %v72_v26 = vsel %vm71_vm12, %v58_v23, 0.0 }
  0xab   :  { %v181_v40 = vpop.xlane.xlu0 %180  ;;  %v205_v41 = vpop.xlane.xlu1 %204  ;;  %v74_v27 = vsel %vm73_vm11, %v72_v26, 0.0 }
  0xac   :  { %v234_v42 = vmul.f32 %v181_v40, %v181_v40  ;;  %v242_v52 = vmul.f32 %v205_v41, %v205_v41 }
  0xad   :  { %v184_v46 = vpop.xlane.xlu2 %183 }
  0xae   :  { %v266_v49 = vperm.slane %v234_v42, %v564_v17  ;;  %v235_v50 = vmul.f32 %v184_v46, %v184_v46  ;;  %v274_v61 = vperm.slane %v242_v52, %v564_v17  ;;  %v474_v46 = vmov 2.0  }
  0xb0   :  { %v267_v54 = vperm.slane %v235_v50, %v564_v17  ;;  %v286_v55 = vsel %vm285_vm6, %v266_v49, %v284_v53  ;;  %v294_v5 = vsel %vm285_vm6, %v274_v61, %v293_v4 }
  0xb2   :  { %v288_v59 = vsel %vm287_vm7, %v267_v54, %v286_v55 }
  0xb3   :  { %v208_v62 = vpop.xlane.xlu0 %207  ;;  %v298_v63 = vsel %vm160_vm0, %v288_v59, 0.0  ;;  %v213_v8 = vpop.xlane.xlu1 %212 }
  0xb4   :  { %v243_v2 = vmul.f32 %v208_v62, %v208_v62  ;;  %299 = vadd.xlane.f32.xlu0 %v298_v63  ;;  %v219_v10 = vperm.slane %v213_v8, %v564_v17 }
  0xb5   :  { %v216_v9 = vpop.xlane.xlu2 %215 }
  0xb6   :  { %v275_v3 = vperm.slane %v243_v2, %v564_v17  ;;  %v220_v11 = vperm.slane %v216_v9, %v564_v17 }
  0xb8   :  { %v295_v6 = vsel %vm287_vm7, %v275_v3, %v294_v5  ;;  %v222_v12 = vsel %vm221_vm1, %v220_v11, %v219_v10 }
  0xb9   :  { %v301_v7 = vsel %vm160_vm0, %v295_v6, 0.0  ;;  %v225_v13 = vsel %vm224_vm8, %v222_v12, 0.0 }
  0xba   :  { %302 = vadd.xlane.f32.xlu1 %v301_v7  ;;  %226 = vadd.xlane.f32.xlu2 %v225_v13 }
  0xc2   :  { %75 = vadd.xlane.f32.xlu1 %v74_v27 }
 0x127   :  { %v300_v15 = vpop.xlane.xlu0 %299 }
 0x128   :  { %v306_v1 = vperm.slane %v300_v15, %v564_v17 }
 0x12d   :  { %v303_v16 = vpop.xlane.xlu1 %302  ;;  %v227_v28 = vpop.xlane.xlu2 %226 }
 0x12e   :  { %v307_v18 = vperm.slane %v303_v16, %v564_v17  ;;  %v313_v29 = vmul.f32 2.0, %v227_v28 }
 0x130   :  { %v308_v0 = vsel %vm221_vm1, %v307_v18, %v306_v1 }
 0x131   :  { %v310_v19 = vsel %vm224_vm8, %v308_v0, 0.0 }
 0x132   :  { %311 = vadd.xlane.f32.xlu0 %v310_v19 }
 0x135   :  { %v76_v43 = vpop.xlane.xlu1 %75 }
 0x136   :  { %v77_v44 = vrot.slane %v76_v43, 4 }
 0x138   :  { %v78_v45 = vadd.f32 %v77_v44, %v76_v43 }
 0x13a   :  { %v79_v47 = vrot.slane %v78_v45, 2 }
 0x13c   :  { %v80_v50 = vadd.f32 %v79_v47, %v78_v45 }
 0x13e   :  { %v81_v52 = vrot.slane %v80_v50, 1 }
 0x140   :  { %v82_v54 = vadd.f32 %v81_v52, %v80_v50 }
 0x142   :  { %372 = vpush %v82_v54 }
 0x173   :  { %s373_s27 = spop %372 }
 0x174   :  { %s84_s28 = ssub.f32 0.0, %s373_s27 }
 0x1a5   :  { %v312_v30 = vpop.xlane.xlu0 %311 }
 0x1a6   :  { %v314_v31 = vsub.f32 %v312_v30, %v313_v29 }
 0x1a8   :  { %v315_v32 = vadd.f32 8.0, %v314_v31 }
 0x1aa   :  { %v316_v33 = vmax.f32 %v315_v32, 0.0 }
 0x1ac   :  { %385 = vrsqrt.f32 %v316_v33  ;;  %vm324_vm13 = vcmp.eq.f32.partialorder %v316_v33, inf  ;;  %v327_v40 = vand.u32 2147483648, %v316_v33  ;;  %vm326_vm15 = vcmp.eq.f32.partialorder %v316_v33, 0.0 }
 0x1ad   :  { %387 = vrcp.f32 %v474_v46 }
 0x1b2   :  { %v386_v14 = vpop.eup %385 }
 0x1b3   :  { %v318_v34 = vmul.f32 %v386_v14, %v316_v33  ;;  %v388_v48 = vpop.eup %387 }
 0x1b4   :  { %v86_v49 = vmul.f32 2.0, %v388_v48  ;;  %vm90_vm0 = vweird.f32 %v388_v48 }
 0x1b5   :  { %v319_v35 = vmul.f32 %v386_v14, %v318_v34 }
 0x1b6   :  { %v87_v51 = vsub.f32 1.0, %v86_v49 }
 0x1b7   :  { %v320_v36 = vmul.f32 0.5, %v319_v35 }
 0x1b8   :  { %v88_v53 = vmul.f32 %v388_v48, %v87_v51 }
 0x1b9   :  { %v321_v37 = vsub.f32 1.5, %v320_v36 }
 0x1ba   :  { %v89_v55 = vadd.f32 %v388_v48, %v88_v53 }
 0x1bb   :  { %v322_v38 = vmul.f32 %v386_v14, %v321_v37 }
 0x1bc   :  { %v91_v56 = vsel %vm90_vm0, %v388_v48, %v89_v55 }
 0x1bd   :  { %v323_v39 = vmul.f32 %v322_v38, %v316_v33  ;;  %374 = vpush %v91_v56 }
 0x1bf   :  { %v325_v17 = vsel %vm324_vm13, %v316_v33, %v323_v39 }
 0x1c0   :  { %v328_v41 = vsel %vm326_vm15, %v327_v40, %v325_v17 }
 0x1c1   :  { %v330_v42 = vsel %vm329_vm14, %v328_v41, 0.0 }
 0x1c2   :  { %331 = vadd.xlane.f32.xlu2 %v330_v42 }
 0x1ee   :  { %s375_s29 = spop %374 }
 0x1ef   :  { %s93_s8 = smul.f32 %s375_s29, %s84_s28 }
 0x235   :  { %v332_v57 = vpop.xlane.xlu2 %331 }
 0x236   :  { %v333_v58 = vrot.slane %v332_v57, 4 }
 0x238   :  { %v334_v59 = vadd.f32 %v333_v58, %v332_v57 }
 0x23a   :  { %v335_v60 = vrot.slane %v334_v59, 2 }
 0x23c   :  { %v336_v61 = vadd.f32 %v335_v60, %v334_v59 }
 0x23e   :  { %v337_v62 = vrot.slane %v336_v61, 1 }
 0x240   :  { %v338_v63 = vadd.f32 %v337_v62, %v336_v61 }
 0x242   :  { %376 = vpush %v338_v63 }
 0x273   :  { %s377_s30 = spop %376 }
 0x274   :  { %s348_s4 = smul.f32 %s377_s30, %s375_s29 }
 0x276   :  { %s349_s9 = smul.f32 0.001, %s348_s4 }
 0x278   :  { %s350_s10 = sadd.f32 %s349_s9, %s93_s8 }
 0x27a   :  { %352 = sst [smem:[#allocation9]] %s350_s10 }
 0x27b   :  { %361 = dma.smem_to_hbm %s475_s11, 16, %s359_s7, [#allocation5]  }
 0x27c   :  { %467 = dma.done.wait [#allocation5], 16  }
 0x27d   :  { %468 = vsyncadd [#allocation5], 4294967280 }
 0x27e   :  { %366 = sfence }
 0x27f   :  { %367 = vsyncpa [#allocation3], 1 }
 0x280   :  { %368 = vsyncpa [#allocation8], 1 }
 0x281   :  { %369 = vsyncpa [#allocation4], 1 }
 0x282   :  { %370 = vsyncpa [#allocation5], 1 }

</bundles_post_ra>
